<compile_context>
chip_gen: v5e
topology: v5e:2x2
jax: 0.10.0
libtpu: 0.0.40
codegen_flags: <defaults>
</compile_context>

<pallas_src>
import functools
import math

import jax
import jax.numpy as jnp
from jax.experimental import pallas as pl
from jax.experimental.pallas import tpu as pltpu

LANE = 128                      # TPU lane width -> pad Q-value output columns to this
SUBLANE = 8
MAX_TILE_B = 1024               # batch-tile cap (raised from 256 per perf review)
MIN_SPLIT_B = 256               # above this, force >= 2 grid steps (v7x dual-TC sharding)
VMEM_LIMIT_BYTES = 32 * 1024 * 1024


def _round_up(x, m):
    return ((x + m - 1) // m) * m


def _batch_tiling(batch):
    """Choose (tile_b, padded_batch, num_tiles) minimizing batch padding.

    tile_b is a multiple of 8 sublanes and capped at MAX_TILE_B; for batches above
    MIN_SPLIT_B we keep >= 2 tiles so the "parallel" grid axis can use both v7x cores.
    """
    b8 = _round_up(max(batch, 1), SUBLANE)
    num_tiles = pl.cdiv(b8, MAX_TILE_B)
    if b8 > MIN_SPLIT_B:
        num_tiles = max(num_tiles, 2)
    tile_b = _round_up(pl.cdiv(b8, num_tiles), SUBLANE)
    padded_batch = num_tiles * tile_b
    return tile_b, padded_batch, num_tiles


# ----------------------------------------------------------------------------- kernels
def _mlp_body(x_ref, w1_ref, b1_ref, w2_ref, b2_ref, w3_ref, b3_ref):
    # bf16 operands into the MXU, f32 accumulation, f32 elementwise epilogue.
    x = x_ref[...].astype(jnp.bfloat16)
    h1 = jnp.dot(x, w1_ref[...], preferred_element_type=jnp.float32) + b1_ref[...]
    h1 = jnp.maximum(h1, 0.0).astype(jnp.bfloat16)
    h2 = jnp.dot(h1, w2_ref[...], preferred_element_type=jnp.float32) + b2_ref[...]
    h2 = jnp.maximum(h2, 0.0).astype(jnp.bfloat16)
    q = jnp.dot(h2, w3_ref[...], preferred_element_type=jnp.float32) + b3_ref[...]
    return q  # f32, (tile_b, n_out_padded)


def _dqn_mlp_kernel(x_ref, w1_ref, b1_ref, w2_ref, b2_ref, w3_ref, b3_ref, o_ref):
    q = _mlp_body(x_ref, w1_ref, b1_ref, w2_ref, b2_ref, w3_ref, b3_ref)
    o_ref[...] = q.astype(o_ref.dtype)          # bf16 lane-dense store


def _dqn_argmax_kernel(num_actions, x_ref, w1_ref, b1_ref, w2_ref, b2_ref,
                       w3_ref, b3_ref, a_ref):
    # Fused act(): MLP + argmax over the first `num_actions` lanes (XLU reduces).
    q = _mlp_body(x_ref, w1_ref, b1_ref, w2_ref, b2_ref, w3_ref, b3_ref)
    n_out = q.shape[1]
    col = jax.lax.broadcasted_iota(jnp.int32, q.shape, 1)
    qm = jnp.where(col < num_actions, q, -jnp.inf)
    m = jnp.max(qm, axis=1, keepdims=True)
    idx = jnp.min(jnp.where(qm == m, col, n_out), axis=1, keepdims=True)
    a_ref[...] = idx.astype(jnp.int32)


# ----------------------------------------------------------------------------- wrappers
def _mlp_in_specs(tile_b, in_features, hidden, n_out):
    return [
        pl.BlockSpec((tile_b, in_features), lambda i: (i, 0)),   # x: batch-tiled
        pl.BlockSpec((in_features, hidden), lambda i: (0, 0)),   # W1: resident
        pl.BlockSpec((1, hidden), lambda i: (0, 0)),             # b1: resident
        pl.BlockSpec((hidden, hidden), lambda i: (0, 0)),        # W2: resident
        pl.BlockSpec((1, hidden), lambda i: (0, 0)),             # b2: resident
        pl.BlockSpec((hidden, n_out), lambda i: (0, 0)),         # W3 (padded): resident
        pl.BlockSpec((1, n_out), lambda i: (0, 0)),              # b3 (padded): resident
    ]


def _cost(padded_batch, in_features, hidden, n_out, x_itemsize, out_bytes_per_row):
    flops = 2 * padded_batch * (in_features * hidden + hidden * hidden + hidden * n_out)
    bytes_accessed = (
        padded_batch * in_features * x_itemsize
        + (in_features * hidden + hidden * hidden + hidden * n_out) * 2   # bf16 weights
        + (2 * hidden + n_out) * 4                                        # f32 biases
        + padded_batch * out_bytes_per_row)
    return pl.CostEstimate(flops=flops, transcendentals=0, bytes_accessed=bytes_accessed)


@functools.partial(jax.jit, static_argnames=("num_actions",))
def dqn_forward_pallas(x, kernel_params, num_actions):
    """x: (batch, in_features) f32 or bf16.
    kernel_params: [(W1,b1),(W2,b2),(W3p,b3p)] with W:(in,out) bf16, b:(1,out) f32,
    where the last layer is already zero-padded to a multiple of LANE columns.
    Returns bf16 Q-values of shape (batch, num_actions)."""
    (w1, b1), (w2, b2), (w3, b3) = kernel_params
    batch, in_features = x.shape
    hidden = w1.shape[1]
    n_out = w3.shape[1]  # padded to a multiple of LANE

    tile_b, padded_batch, num_tiles = _batch_tiling(batch)
    if padded_batch != batch:
        # padding is now at most tile-granularity-minimized (<= a few rows typically)
        # TODO(synk): a masked last-tile store would avoid this extra pass entirely.
        x = jnp.pad(x, ((0, padded_batch - batch), (0, 0)))

    q_padded = pl.pallas_call(
        _dqn_mlp_kernel,
        out_shape=jax.ShapeDtypeStruct((padded_batch, n_out), jnp.bfloat16),
        grid=(num_tiles,),
        in_specs=_mlp_in_specs(tile_b, in_features, hidden, n_out),
        out_specs=pl.BlockSpec((tile_b, n_out), lambda i: (i, 0)),
        compiler_params=pltpu.CompilerParams(
            dimension_semantics=("parallel",),
            vmem_limit_bytes=VMEM_LIMIT_BYTES),
        cost_estimate=_cost(padded_batch, in_features, hidden, n_out,
                            x.dtype.itemsize, 2 * n_out),
    )(x, w1, b1, w2, b2, w3, b3)

    # drop batch padding + lane padding outside the kernel
    return q_padded[:batch, :num_actions]


@functools.partial(jax.jit, static_argnames=("num_actions",))
def dqn_act_pallas(x, kernel_params, num_actions):
    """Fused inference path: MLP + argmax in one kernel. Returns int32 (batch,)."""
    (w1, b1), (w2, b2), (w3, b3) = kernel_params
    batch, in_features = x.shape
    hidden = w1.shape[1]
    n_out = w3.shape[1]

    tile_b, padded_batch, num_tiles = _batch_tiling(batch)
    if padded_batch != batch:
        x = jnp.pad(x, ((0, padded_batch - batch), (0, 0)))

    actions = pl.pallas_call(
        functools.partial(_dqn_argmax_kernel, num_actions),
        out_shape=jax.ShapeDtypeStruct((padded_batch, 1), jnp.int32),
        grid=(num_tiles,),
        in_specs=_mlp_in_specs(tile_b, in_features, hidden, n_out),
        out_specs=pl.BlockSpec((tile_b, 1), lambda i: (i, 0)),
        compiler_params=pltpu.CompilerParams(
            dimension_semantics=("parallel",),
            vmem_limit_bytes=VMEM_LIMIT_BYTES),
        cost_estimate=_cost(padded_batch, in_features, hidden, n_out,
                            x.dtype.itemsize, 4),
    )(x, w1, b1, w2, b2, w3, b3)

    return actions[:batch, 0]


# ----------------------------------------------------------------------------- module
class _DummyActionSpace:
    def __init__(self, n):
        self.n = n


class _DummyEnv:
    def __init__(self, n_actions):
        self.action_space = _DummyActionSpace(n_actions)


def _init_linear(key, fan_in, fan_out):
    """Deterministic init mirroring PyTorch nn.Linear default (uniform +/- 1/sqrt(fan_in))."""
    kw, kb = jax.random.split(key)
    bound = 1.0 / math.sqrt(fan_in)
    # stored already transposed: (in_features, out_features)
    w = jax.random.uniform(kw, (fan_in, fan_out), jnp.float32, -bound, bound)
    b = jax.random.uniform(kb, (1, fan_out), jnp.float32, -bound, bound)
    return w, b


class QNetwork:
    def __init__(self, name, env, input_shape, num_actions, robust=False, width=1,
                 key=jax.random.PRNGKey(0)):
        self.env = env
        self.input_shape = input_shape
        self.num_actions = num_actions
        self.robust = robust
        if name == "DQN":
            dims = [input_shape[0], 128 * width, 128 * width, env.action_space.n]
            keys = jax.random.split(key, 3)
            # master params in f32 (for reference / training)
            self.params = [
                _init_linear(keys[i], dims[i], dims[i + 1]) for i in range(3)
            ]
            # kernel-side params: bf16 weights, f32 biases, output layer zero-padded
            # to a multiple of LANE for lane-dense MXU output / stores.
            (w1, b1), (w2, b2), (w3, b3) = self.params
            n_out_padded = _round_up(env.action_space.n, LANE)
            w3p = jnp.zeros((dims[2], n_out_padded), jnp.float32).at[:, :dims[3]].set(w3)
            b3p = jnp.zeros((1, n_out_padded), jnp.float32).at[:, :dims[3]].set(b3)
            self.kernel_params = [
                (w1.astype(jnp.bfloat16), b1),
                (w2.astype(jnp.bfloat16), b2),
                (w3p.astype(jnp.bfloat16), b3p),
            ]
        else:
            # TODO(synk): CnnDQN / DuelingCnnDQN conv branches not implemented in Pallas here.
            raise NotImplementedError(
                "{} network structure not implemented.".format(name))
        if self.robust:
            # TODO(synk): BoundedModule (auto_LiRPA) has no Pallas equivalent.
            raise NotImplementedError("robust=True not supported")

    def forward(self, x):
        return dqn_forward_pallas(x, self.kernel_params, self.num_actions)

    def act(self, state, epsilon=0):
        # Matches the PyTorch module: epsilon is accepted but act() is pure argmax.
        return dqn_act_pallas(state[None, :], self.kernel_params, self.num_actions)

    # pure-JAX reference mirroring the kernel's bf16-matmul / f32-accumulate semantics
    def forward_ref(self, x):
        (w1, b1), (w2, b2), (w3, b3) = self.params

        def lin(a, w, b):
            return jnp.dot(a.astype(jnp.bfloat16), w.astype(jnp.bfloat16),
                           preferred_element_type=jnp.float32) + b

        h1 = jnp.maximum(lin(x, w1, b1), 0.0)
        h2 = jnp.maximum(lin(h1, w2, b2), 0.0)
        return lin(h2, w3, b3)   # f32 Q-values


# ----------------------------------------------------------------------------- main
if __name__ == "__main__":
    key = jax.random.PRNGKey(0)
    k_params, k_in1, k_in2 = jax.random.split(key, 3)

    batch = 2
    in_features = 32     # input_shape[0]
    num_actions = 8      # env.action_space.n
    width = 1

    env = _DummyEnv(num_actions)
    net = QNetwork("DQN", env, (in_features,), num_actions, robust=False,
                   width=width, key=k_params)

    # small-batch check (single tile, exercises batch padding to the 8-sublane tile)
    x = jax.random.normal(k_in1, (batch, in_features), jnp.float32)
    q = jax.block_until_ready(net.forward(x))
    q_ref = net.forward_ref(x)
    assert q.shape == (batch, num_actions)
    assert q.dtype == jnp.bfloat16
    assert jnp.allclose(q.astype(jnp.float32), q_ref, atol=2e-2, rtol=2e-2), \
        "mismatch vs reference (small batch)"

    # larger-batch check (exercises minimized-padding multi-tile grid: 2 tiles of 152)
    big_batch = 300
    xb = jax.random.normal(k_in2, (big_batch, in_features), jnp.float32)
    qb = jax.block_until_ready(net.forward(xb))
    qb_ref = net.forward_ref(xb)
    assert qb.shape == (big_batch, num_actions)
    assert jnp.allclose(qb.astype(jnp.float32), qb_ref, atol=2e-2, rtol=2e-2), \
        "mismatch vs reference (big batch)"

    # exercise the fused act() path and compare against reference argmax
    a = jax.block_until_ready(net.act(x[0]))
    assert a.shape == (1,)
    a_ref = jnp.argmax(net.forward_ref(x[:1]), axis=1)
    assert int(a[0]) == int(a_ref[0]), "fused argmax mismatch vs reference"

    print("KERNEL_OK")
</pallas_src>

<mosaic_0001>
module attributes {stable_mosaic.version = 11 : i64} {
  func.func @_dqn_mlp_kernel(%arg0: i32, %arg1: memref<8x32xf32, #tpu.memory_space<vmem>>, %arg2: memref<32x128xbf16, #tpu.memory_space<vmem>>, %arg3: memref<1x128xf32, #tpu.memory_space<vmem>>, %arg4: memref<128x128xbf16, #tpu.memory_space<vmem>>, %arg5: memref<1x128xf32, #tpu.memory_space<vmem>>, %arg6: memref<128x128xbf16, #tpu.memory_space<vmem>>, %arg7: memref<1x128xf32, #tpu.memory_space<vmem>>, %arg8: memref<8x128xbf16, #tpu.memory_space<vmem>>) attributes {dimension_semantics = [#tpu.dimension_semantics<parallel>], iteration_bounds = array<i64: 1>, scalar_prefetch = 0 : i64, scratch_operands = 0 : i64, tpu.core_type = #tpu.core_type<tc>, window_params = [{transform_indices = @transform_0, window_bounds = array<i64: 8, 32>}, {pipeline_mode = #tpu.pipeline_mode<synchronous>, transform_indices = @transform_1, window_bounds = array<i64: 32, 128>}, {pipeline_mode = #tpu.pipeline_mode<synchronous>, transform_indices = @transform_2, window_bounds = array<i64: 1, 128>}, {pipeline_mode = #tpu.pipeline_mode<synchronous>, transform_indices = @transform_3, window_bounds = array<i64: 128, 128>}, {pipeline_mode = #tpu.pipeline_mode<synchronous>, transform_indices = @transform_4, window_bounds = array<i64: 1, 128>}, {pipeline_mode = #tpu.pipeline_mode<synchronous>, transform_indices = @transform_5, window_bounds = array<i64: 128, 128>}, {pipeline_mode = #tpu.pipeline_mode<synchronous>, transform_indices = @transform_6, window_bounds = array<i64: 1, 128>}, {transform_indices = @transform_7, window_bounds = array<i64: 8, 128>}]} {
    %c0 = arith.constant 0 : index
    %c0_0 = arith.constant 0 : index
    %0 = vector.load %arg1[%c0, %c0_0] : memref<8x32xf32, #tpu.memory_space<vmem>>, vector<8x32xf32>
    %1 = arith.truncf %0 : vector<8x32xf32> to vector<8x32xbf16>
    %c0_1 = arith.constant 0 : index
    %c0_2 = arith.constant 0 : index
    %2 = vector.load %arg2[%c0_1, %c0_2] : memref<32x128xbf16, #tpu.memory_space<vmem>>, vector<32x128xbf16>
    %cst = arith.constant dense<0.000000e+00> : vector<8x128xf32>
    %3 = tpu.matmul %1, %2, %cst {dimension_numbers = #tpu.dot_dimension_numbers<[1], [0], [0], [1], [0, 0, 1, 1], [], []>} : vector<8x32xbf16>, vector<32x128xbf16>, vector<8x128xf32> -> vector<8x128xf32>
    %c0_3 = arith.constant 0 : index
    %c0_4 = arith.constant 0 : index
    %4 = vector.load %arg3[%c0_3, %c0_4] : memref<1x128xf32, #tpu.memory_space<vmem>>, vector<1x128xf32>
    %5 = vector.broadcast %4 : vector<1x128xf32> to vector<8x128xf32>
    %6 = arith.addf %3, %5 : vector<8x128xf32>
    %cst_5 = arith.constant 0.000000e+00 : f32
    %7 = vector.broadcast %cst_5 : f32 to vector<8x128xf32>
    %8 = arith.maximumf %6, %7 : vector<8x128xf32>
    %9 = arith.truncf %8 : vector<8x128xf32> to vector<8x128xbf16>
    %c0_6 = arith.constant 0 : index
    %c0_7 = arith.constant 0 : index
    %10 = vector.load %arg4[%c0_6, %c0_7] : memref<128x128xbf16, #tpu.memory_space<vmem>>, vector<128x128xbf16>
    %cst_8 = arith.constant dense<0.000000e+00> : vector<8x128xf32>
    %11 = tpu.matmul %9, %10, %cst_8 {dimension_numbers = #tpu.dot_dimension_numbers<[1], [0], [0], [1], [0, 0, 1, 1], [], []>} : vector<8x128xbf16>, vector<128x128xbf16>, vector<8x128xf32> -> vector<8x128xf32>
    %c0_9 = arith.constant 0 : index
    %c0_10 = arith.constant 0 : index
    %12 = vector.load %arg5[%c0_9, %c0_10] : memref<1x128xf32, #tpu.memory_space<vmem>>, vector<1x128xf32>
    %13 = vector.broadcast %12 : vector<1x128xf32> to vector<8x128xf32>
    %14 = arith.addf %11, %13 : vector<8x128xf32>
    %cst_11 = arith.constant 0.000000e+00 : f32
    %15 = vector.broadcast %cst_11 : f32 to vector<8x128xf32>
    %16 = arith.maximumf %14, %15 : vector<8x128xf32>
    %17 = arith.truncf %16 : vector<8x128xf32> to vector<8x128xbf16>
    %c0_12 = arith.constant 0 : index
    %c0_13 = arith.constant 0 : index
    %18 = vector.load %arg6[%c0_12, %c0_13] : memref<128x128xbf16, #tpu.memory_space<vmem>>, vector<128x128xbf16>
    %cst_14 = arith.constant dense<0.000000e+00> : vector<8x128xf32>
    %19 = tpu.matmul %17, %18, %cst_14 {dimension_numbers = #tpu.dot_dimension_numbers<[1], [0], [0], [1], [0, 0, 1, 1], [], []>} : vector<8x128xbf16>, vector<128x128xbf16>, vector<8x128xf32> -> vector<8x128xf32>
    %c0_15 = arith.constant 0 : index
    %c0_16 = arith.constant 0 : index
    %20 = vector.load %arg7[%c0_15, %c0_16] : memref<1x128xf32, #tpu.memory_space<vmem>>, vector<1x128xf32>
    %21 = vector.broadcast %20 : vector<1x128xf32> to vector<8x128xf32>
    %22 = arith.addf %19, %21 : vector<8x128xf32>
    %23 = arith.truncf %22 : vector<8x128xf32> to vector<8x128xbf16>
    %c0_17 = arith.constant 0 : index
    %c0_18 = arith.constant 0 : index
    %24 = vector.load %arg8[%c0_17, %c0_18] : memref<8x128xbf16, #tpu.memory_space<vmem>>, vector<8x128xbf16>
    tpu.vector_store %arg8[%c0_17, %c0_18], %23 {strides = array<i32>} : memref<8x128xbf16, #tpu.memory_space<vmem>>, vector<8x128xbf16>,
    return
  }
  func.func @transform_0(%arg0: i32) -> (i32, i32) {
    %c0_i32 = arith.constant 0 : i32
    %c0_i32_0 = arith.constant 0 : i32
    return %arg0, %c0_i32 : i32, i32
  }
  func.func @transform_1(%arg0: i32) -> (i32, i32) {
    %c0_i32 = arith.constant 0 : i32
    %c0_i32_0 = arith.constant 0 : i32
    %c0_i32_1 = arith.constant 0 : i32
    return %c0_i32, %c0_i32_0 : i32, i32
  }
  func.func @transform_2(%arg0: i32) -> (i32, i32) {
    %c0_i32 = arith.constant 0 : i32
    %c0_i32_0 = arith.constant 0 : i32
    %c0_i32_1 = arith.constant 0 : i32
    return %c0_i32, %c0_i32_0 : i32, i32
  }
  func.func @transform_3(%arg0: i32) -> (i32, i32) {
    %c0_i32 = arith.constant 0 : i32
    %c0_i32_0 = arith.constant 0 : i32
    %c0_i32_1 = arith.constant 0 : i32
    return %c0_i32, %c0_i32_0 : i32, i32
  }
  func.func @transform_4(%arg0: i32) -> (i32, i32) {
    %c0_i32 = arith.constant 0 : i32
    %c0_i32_0 = arith.constant 0 : i32
    %c0_i32_1 = arith.constant 0 : i32
    return %c0_i32, %c0_i32_0 : i32, i32
  }
  func.func @transform_5(%arg0: i32) -> (i32, i32) {
    %c0_i32 = arith.constant 0 : i32
    %c0_i32_0 = arith.constant 0 : i32
    %c0_i32_1 = arith.constant 0 : i32
    return %c0_i32, %c0_i32_0 : i32, i32
  }
  func.func @transform_6(%arg0: i32) -> (i32, i32) {
    %c0_i32 = arith.constant 0 : i32
    %c0_i32_0 = arith.constant 0 : i32
    %c0_i32_1 = arith.constant 0 : i32
    return %c0_i32, %c0_i32_0 : i32, i32
  }
  func.func @transform_7(%arg0: i32) -> (i32, i32) {
    %c0_i32 = arith.constant 0 : i32
    %c0_i32_0 = arith.constant 0 : i32
    return %arg0, %c0_i32 : i32, i32
  }
}

</mosaic_0001>

<bundles_post_ra>
// kernel: dqn_forward_pallas.1
= control target key start
LH: loop header
LB: loop body
LE: loop exit
PB: predicated region body
PF: predicated region fallthrough
CT: control target
= control target key end

     0   :  { %12 = vsyncpa [#allocation3], 0  ;;  %s531_s0 = inlined_call_operand.vmem [shape: f32[8,32], index: 0, kind: input, shape index: {}]   ;;  %s532_s1 = inlined_call_operand.hbm [shape: bf16[32,128], index: 1, kind: input, shape index: {}]   ;;  %s533_s2 = inlined_call_operand.vmem [shape: f32[1,128], index: 2, kind: input, shape index: {}]   ;;  %s534_s3 = inlined_call_operand.hbm [shape: bf16[128,128], index: 3, kind: input, shape index: {}]   ;;  %s535_s4 = inlined_call_operand.vmem [shape: f32[1,128], index: 4, kind: input, shape index: {}]   ;;  %s536_s5 = inlined_call_operand.hbm [shape: bf16[128,128], index: 5, kind: input, shape index: {}]   ;;  %s537_s6 = inlined_call_operand.vmem [shape: f32[1,128], index: 6, kind: input, shape index: {}]   ;;  %s538_s7 = inlined_call_operand.vmem [shape: bf16[8,128], index: 7, kind: output, shape index: {}]  }
   0x1   :  { %13 = vsyncpa [#allocation5], 0  ;;  %s35_s26 = sshll.u32 %s534_s3, 4  ;;  %s462_s27 = smov [#allocation4]   ;;  %s36_s26 = int_to_ptr.hbm [resolvable:$true] %s35_s26 }
   0x2   :  { %s37_s28 = sshll.u32 %s462_s27, 4  ;;  %s20_s8 = sshll.u32 %s532_s1, 4  ;;  %s38_s28 = int_to_ptr.vmem [resolvable:$true] %s37_s28  ;;  %s21_s8 = int_to_ptr.hbm [resolvable:$true] %s20_s8 }
   0x3   :  { %s463_s9 = smov 64   ;;  %s464_s10 = smov 4  }
   0x4   :  { %43 = dma.hbm_to_vmem [thread:$0]  %s36_s26, 1024, %s38_s28, [#allocation5], %s463_s9, %s463_s9, %s464_s10  }
   0x5   :  { %s465_s11 = smov [#allocation2]   ;;  %s50_s15 = sshll.u32 %s536_s5, 4  ;;  %s51_s15 = int_to_ptr.hbm [resolvable:$true] %s50_s15 }
   0x6   :  { %s22_s12 = sshll.u32 %s465_s11, 4  ;;  %s466_s3 = smov [#allocation6]   ;;  %s23_s12 = int_to_ptr.vmem [resolvable:$true] %s22_s12 }
   0x7   :  { %28 = dma.hbm_to_vmem [thread:$0]  %s21_s8, 256, %s23_s12, [#allocation3], %s463_s9, %s463_s9, %s464_s10  }
   0x8   :  { %s52_s16 = sshll.u32 %s466_s3, 4  ;;  %s53_s16 = int_to_ptr.vmem [resolvable:$true] %s52_s16 }
   0x9   :  { %58 = dma.hbm_to_vmem [thread:$0]  %s51_s15, 1024, %s53_s16, [#allocation5], %s463_s9, %s463_s9, %s464_s10  }
   0xa   :  { %458 = dma.done.wait [#allocation3], 256  }
   0xb   :  { %459 = vsyncadd [#allocation3], 4294967040 }
   0xc   :  { %460 = dma.done.wait [#allocation5], 2048  }
   0xd   :  { %461 = vsyncadd [#allocation5], 4294965248  ;;  %v361_v0 = vld [vmem:[#allocation2 + $0x8] sm:$0xff]  ;;  %v360_v2 = vld [vmem:[#allocation2] sm:$0xff]  ;;  %vm96_vm0 = vcmask 261120  }
   0xe   :  { %v369_v1 = vld [vmem:[#allocation4 + $0x38] sm:$0xff]  ;;  %106 = vmatpush.bf16.msra.mxu0 %v361_v0  ;;  %v74_v3 = vld [vmem:[%s531_s0] sm:$0xff]  ;;  %v367_v6 = vld [vmem:[#allocation4 + $0x28] sm:$0xff] }
   0xf   :  { %183 = vmatpush.bf16.msra.mxu1 %v369_v1  ;;  %v368_v4 = vld [vmem:[#allocation4 + $0x30] sm:$0xff]  ;;  %v75_v5 = vpack.c.bf16 %v74_v3, %v74_v3  ;;  %v366_v7 = vld [vmem:[#allocation4 + $0x20] sm:$0xff]  ;;  %v365_v8 = vld [vmem:[#allocation4 + $0x18] sm:$0xff] }
  0x10   :  { %v364_v9 = vld [vmem:[#allocation4 + $0x10] sm:$0xff]  ;;  %v363_v10 = vld [vmem:[#allocation4 + $0x8] sm:$0xff]  ;;  %v362_v11 = vld [vmem:[#allocation4] sm:$0xff] }
  0x11   :  { %v377_v12 = vld [vmem:[#allocation6 + $0x38] sm:$0xff]  ;;  %v376_v13 = vld [vmem:[#allocation6 + $0x30] sm:$0xff]  ;;  %v375_v14 = vld [vmem:[#allocation6 + $0x28] sm:$0xff] }
  0x12   :  { %107 = vmatpush.bf16.msra.mxu0 %v360_v2  ;;  %266 = vmatpush.bf16.msra.mxu2 %v377_v12  ;;  %v374_v15 = vld [vmem:[#allocation6 + $0x20] sm:$0xff]  ;;  %v373_v16 = vld [vmem:[#allocation6 + $0x18] sm:$0xff]  ;;  %v372_v17 = vld [vmem:[#allocation6 + $0x10] sm:$0xff] }
  0x13   :  { %184 = vmatpush.bf16.msra.mxu1 %v368_v4  ;;  %v383_v18 = vld [vmem:[%s533_s2] ss:$0 sm:$0xff]  ;;  %v371_v24 = vld [vmem:[#allocation6 + $0x8] sm:$0xff]  ;;  %v370_v25 = vld [vmem:[#allocation6] sm:$0xff] }
  0x14   :  { %v384_v26 = vld [vmem:[%s535_s4] ss:$0 sm:$0xff] }
  0x15   :  { %295 = vmatmul.msk.bf16.vlgmr.msra.gmra.mxu0 %vm96_vm0, %v75_v5  ;;  %v385_v32 = vld [vmem:[%s537_s6] ss:$0 sm:$0xff] }
  0x16   :  { %267 = vmatpush.bf16.msra.mxu2 %v376_v13 }
  0x17   :  { %185 = vmatpush.bf16.msra.mxu1 %v367_v6 }
  0x1a   :  { %268 = vmatpush.bf16.msra.mxu2 %v375_v14 }
  0x1b   :  { %186 = vmatpush.bf16.msra.mxu1 %v366_v7 }
  0x1e   :  { %269 = vmatpush.bf16.msra.mxu2 %v374_v15 }
  0x1f   :  { %187 = vmatpush.bf16.msra.mxu1 %v365_v8 }
  0x22   :  { %270 = vmatpush.bf16.msra.mxu2 %v373_v16 }
  0x23   :  { %188 = vmatpush.bf16.msra.mxu1 %v364_v9 }
  0x26   :  { %271 = vmatpush.bf16.msra.mxu2 %v372_v17 }
  0x27   :  { %189 = vmatpush.bf16.msra.mxu1 %v363_v10 }
  0x2a   :  { %272 = vmatpush.bf16.msra.mxu2 %v371_v24 }
  0x2b   :  { %190 = vmatpush.bf16.msra.mxu1 %v362_v11 }
  0x2e   :  { %273 = vmatpush.bf16.msra.mxu2 %v370_v25 }
  0x92   :  { %v109_v19 = vpop.f32.mrf.mxu0 }
  0x93   :  { %v110_v20 = vadd.f32 %v383_v18, %v109_v19 }
  0x95   :  { %v113_v21 = vmax.f32 %v110_v20, 0.0 }
  0x97   :  { %v114_v22 = vpack.c.bf16 %v113_v21, %v113_v21 }
  0x99   :  { %191 = vmatmul.bf16.vlgmr.msra.gmra.mxu1 %v114_v22 }
  0x9a   :  { %v111_v23 = vpop.f32.mrf.mxu0 }
 0x116   :  { %v192_v27 = vpop.f32.mrf.mxu1 }
 0x117   :  { %v193_v28 = vadd.f32 %v384_v26, %v192_v27 }
 0x119   :  { %v196_v29 = vmax.f32 %v193_v28, 0.0 }
 0x11b   :  { %v197_v30 = vpack.c.bf16 %v196_v29, %v196_v29 }
 0x11d   :  { %274 = vmatmul.bf16.vlgmr.msra.gmra.mxu2 %v197_v30 }
 0x11e   :  { %v194_v31 = vpop.f32.mrf.mxu1 }
 0x1a0   :  { %v275_v33 = vpop.f32.mrf.mxu2 }
 0x1a1   :  { %v276_v34 = vadd.f32 %v385_v32, %v275_v33 }
 0x1a3   :  { %v279_v35 = vpack.c.bf16 %v276_v34, %v276_v34 }
 0x1a5   :  { %280 = vst [vmem:[%s538_s7] sm:$0xf] %v279_v35 }
 0x1a8   :  { %v277_v36 = vpop.f32.mrf.mxu2 }
 0x1a9   :  { %285 = vsyncpa [#allocation3], 1 }
 0x1aa   :  { %286 = vsyncpa [#allocation5], 1 }

</bundles_post_ra>
